<compile_context>
chip_gen: v5e
topology: v5e:2x2
jax: 0.10.0
libtpu: 0.0.40
codegen_flags: <defaults>
</compile_context>

<pallas_src>
import math

import jax
import jax.numpy as jnp
from jax.experimental import pallas as pl
from jax.experimental.pallas import tpu as pltpu

_EPS = 1e-4  # F.normalize eps used by PixelNorm


def _block_kernel(x_ref, h_ref, m_ref, w_ref, b_ref, o_ref):
    """One grid step = (batch element b, L-tile j).

    x_ref : (Cin, TL)      bf16, pre-masked input tile (channels on sublanes, L on lanes)
    h_ref : (Cin, 2)       bf16 halo: column j*TL-1 (left) and (j+1)*TL (right), 0 at edges
    m_ref : (1, TL)        f32 keep-mask (1.0 keep / 0.0 drop)
    w_ref : (3, Cout, Cin) f32 conv weight, tap-major (w_ref[k] = weight[:, :, k])
    b_ref : (Cout, 1)      f32 conv bias
    o_ref : (1, Cout, TL)  f32 output tile (lane-dense along L)
    """
    cout = w_ref.shape[1]
    tl = x_ref.shape[-1]

    # Upcast once after the (cheap, bf16) DMA; all math below is f32 (v5e-safe).
    x = x_ref[...].astype(jnp.float32)                       # (Cin, TL)
    halo = h_ref[...].astype(jnp.float32)                    # (Cin, 2)
    lhalo = halo[:, 0:1]                                      # x[:, j*TL - 1]  (or 0)
    rhalo = halo[:, 1:2]                                      # x[:, (j+1)*TL]  (or 0)

    # Shifted views for the k=0 / k=2 taps: lane rolls run on the XLU (non-binding) and the
    # wrapped boundary column is replaced by the halo column via a lane-iota select.
    lane = jax.lax.broadcasted_iota(jnp.int32, (x.shape[0], tl), 1)
    x_left = jnp.where(lane == 0, lhalo, pltpu.roll(x, 1, axis=1))        # x[:, l-1]
    x_right = jnp.where(lane == tl - 1, rhalo, pltpu.roll(x, tl - 1, axis=1))  # x[:, l+1]

    # Conv1d(kernel=3, padding=1): y[:, l] = W0 @ x[:, l-1] + W1 @ x[:, l] + W2 @ x[:, l+1] + b
    y = jnp.dot(w_ref[0], x_left, preferred_element_type=jnp.float32)
    y = y + jnp.dot(w_ref[1], x, preferred_element_type=jnp.float32)
    y = y + jnp.dot(w_ref[2], x_right, preferred_element_type=jnp.float32)
    y = y + b_ref[...]                                        # (Cout, TL) + (Cout, 1)

    # PixelNorm over channels (sublane axis), post-conv mask folded into the per-column
    # scale: masked columns get scale 0 (the min-clamp keeps rsqrt finite, so no 0*inf),
    # kept columns are unaffected because the norm is per-column.
    ss = jnp.sum(y * y, axis=0, keepdims=True)                # (1, TL) cross-sublane reduce
    inv = jnp.minimum(jax.lax.rsqrt(ss), 1.0 / _EPS)          # == 1 / max(||y||, eps)
    scale = m_ref[...] * (inv * math.sqrt(float(cout)))       # mask * rsqrt * sqrt(Cout)
    y = y * scale

    # SiLU.  (nn.Dropout(p=0.0) is an identity, so it is not emitted.)
    y = y * (1.0 / (1.0 + jnp.exp(-y)))

    o_ref[0] = y.astype(o_ref.dtype)


def _choose_l_tile(L, batch, cap_cols=8192):
    """Pick the lane tile TL (multiple of 128).

    Large tiles amortise the ~0.35us/grid-step overhead; padding is bounded so we never
    DMA/compute a large pad fraction; and on v7x we keep >= 2 grid steps when possible so
    both TensorCores get work.  cap_cols=8192 keeps the in-kernel f32 temporaries to a few
    MiB, comfortably inside every generation's scoped VMEM (incl. v7x's 64 MiB physical).
    """
    L128 = ((L + 127) // 128) * 128
    if L128 <= cap_cols:
        tl = L128
    else:
        max_pad = min(L128 // 8, 2048)
        tl = 128                                   # always valid (zero padding)
        for cand in range(256, cap_cols + 1, 128):
            if (-L128) % cand <= max_pad:
                tl = cand                          # largest acceptable tile wins
    # v7x megacore: avoid a 1-step "parallel" grid when the problem can be split.
    if batch * ((L128 + tl - 1) // tl) < 2 and L128 >= 256:
        tl = ((L128 // 2 + 127) // 128) * 128
    return tl


@jax.jit
def block_forward(x_ncl, mask_n1l, weight_oc3, bias_o):
    """x_ncl: (B, Cin, L) f32; mask_n1l: (B, 1, L) bool;
    weight_oc3: (Cout, Cin, 3); bias_o: (Cout,).  Returns (B, Cout, L) f32."""
    B, Cin, L = x_ncl.shape
    Cout = weight_oc3.shape[0]

    TL = _choose_l_tile(L, B)
    nL = -(-L // TL)                     # number of L tiles
    Lp = nL * TL

    # --- wrapper glue (single cheap producer; the big operand streams in bf16) ---
    xm = jnp.where(mask_n1l, x_ncl, 0.0).astype(jnp.bfloat16)        # pre-conv masked_fill
    xmp = jnp.pad(xm, ((0, 0), (0, 0), (0, Lp - L)))                 # (B, Cin, Lp) bf16
    mpad = jnp.pad(mask_n1l.astype(jnp.float32), ((0, 0), (0, 0), (0, Lp - L)))  # (B,1,Lp)

    # Halo columns: for tile j, [left, right] = [x[:, j*TL-1], x[:, (j+1)*TL]] (0 at edges).
    # These carry the conv's 1-column overlap between tiles, so x itself streams only once.
    zero_col = jnp.zeros((B, Cin, 1), jnp.bfloat16)
    if nL > 1:
        lh = jnp.concatenate([zero_col, xmp[:, :, TL - 1::TL][:, :, :nL - 1]], axis=2)
        rh = jnp.concatenate([xmp[:, :, TL::TL][:, :, :nL - 1], zero_col], axis=2)
    else:
        lh = zero_col
        rh = zero_col
    halo = jnp.transpose(jnp.stack([lh, rh], axis=-1), (0, 2, 1, 3))  # (B, nL, Cin, 2)

    # Tap-major weight (3, Cout, Cin) and column-broadcastable bias (Cout, 1); tiny, kept f32.
    w_kco = jnp.transpose(weight_oc3, (2, 0, 1))
    b2 = bias_o.reshape(Cout, 1)

    out = pl.pallas_call(
        _block_kernel,
        out_shape=jax.ShapeDtypeStruct((B, Cout, Lp), jnp.float32),
        grid_spec=pltpu.PrefetchScalarGridSpec(
            num_scalar_prefetch=0,
            grid=(B, nL),
            in_specs=[
                pl.BlockSpec((pl.Squeezed(), Cin, TL), lambda b, j: (b, 0, j)),
                pl.BlockSpec((pl.Squeezed(), pl.Squeezed(), Cin, 2), lambda b, j: (b, j, 0, 0)),
                pl.BlockSpec((pl.Squeezed(), 1, TL), lambda b, j: (b, 0, j)),
                pl.BlockSpec((3, Cout, Cin), lambda b, j: (0, 0, 0)),
                pl.BlockSpec((Cout, 1), lambda b, j: (0, 0)),
            ],
            out_specs=pl.BlockSpec((1, Cout, TL), lambda b, j: (b, 0, j)),
        ),
        compiler_params=pltpu.CompilerParams(
            dimension_semantics=("parallel", "parallel")),
    )(xmp, halo, mpad, w_kco, b2)

    # Only slice when L was actually padded (slice is an extra output copy otherwise).
    return out if Lp == L else out[:, :, :L]


def block_reference(x_ncl, mask_n1l, weight_oc3, bias_o):
    """Pure-JAX f32 reference matching the PyTorch Block.forward semantics."""
    Cout = weight_oc3.shape[0]
    L = x_ncl.shape[-1]
    x = jnp.where(mask_n1l, x_ncl, 0.0)
    xp = jnp.pad(x, ((0, 0), (0, 0), (1, 1)))
    y = sum(jnp.einsum('oc,bcl->bol', weight_oc3[:, :, k], xp[:, :, k:k + L])
            for k in range(3)) + bias_o[None, :, None]
    y = jnp.where(mask_n1l, y, 0.0)
    norm = jnp.maximum(jnp.sqrt(jnp.sum(y * y, axis=1, keepdims=True)), _EPS)
    y = y / norm * math.sqrt(float(Cout))
    return y * jax.nn.sigmoid(y)


def _run_case(key, B, DIM, DIM_OUT, L, drop_p=0.25):
    k_x, k_w, k_b, k_m = jax.random.split(key, 4)
    x = jax.random.normal(k_x, (B, DIM, L), dtype=jnp.float32)
    bound = 1.0 / math.sqrt(DIM * 3)                       # Conv1d default init range
    weight = jax.random.uniform(k_w, (DIM_OUT, DIM, 3), jnp.float32, -bound, bound)
    bias = jax.random.uniform(k_b, (DIM_OUT,), jnp.float32, -bound, bound)
    mask = jax.random.uniform(k_m, (B, 1, L)) > drop_p

    out = block_forward(x, mask, weight, bias)
    jax.block_until_ready(out)

    ref = block_reference(x, mask, weight, bias)
    assert out.shape == (B, DIM_OUT, L)
    # Tolerance accounts for bf16 streaming of x and the hardware rsqrt in PixelNorm;
    # a wrong tap / halo / mask would produce O(1) errors, so this still catches real bugs.
    assert jnp.allclose(out, ref, atol=2e-2, rtol=2e-2), \
        f"max abs err = {jnp.max(jnp.abs(out - ref))}"


if __name__ == "__main__":
    key = jax.random.PRNGKey(0)
    k1, k2 = jax.random.split(key)

    # Primary small case (matches the module's intended shapes).
    _run_case(k1, B=2, DIM=4, DIM_OUT=8, L=16)

    # Multi-tile case: exercises the halo / padding / megacore-split paths
    # (B=1, L=300 -> two L tiles of 256 lanes, 212 padded columns sliced off).
    _run_case(k2, B=1, DIM=6, DIM_OUT=6, L=300)

    print("KERNEL_OK")
</pallas_src>

<mosaic_0001>
module attributes {stable_mosaic.version = 11 : i64} {
  func.func @_block_kernel(%arg0: i32, %arg1: i32, %arg2: memref<1x4x128xbf16, #tpu.memory_space<vmem>>, %arg3: memref<1x1x4x2xbf16, #tpu.memory_space<vmem>>, %arg4: memref<1x1x128xf32, #tpu.memory_space<vmem>>, %arg5: memref<3x8x4xf32, #tpu.memory_space<vmem>>, %arg6: memref<8x1xf32, #tpu.memory_space<vmem>>, %arg7: memref<1x8x128xf32, #tpu.memory_space<vmem>>) attributes {dimension_semantics = [#tpu.dimension_semantics<parallel>, #tpu.dimension_semantics<parallel>], iteration_bounds = array<i64: 2, 1>, scalar_prefetch = 0 : i64, scratch_operands = 0 : i64, tpu.core_type = #tpu.core_type<tc>, window_params = [{transform_indices = @transform_0, window_bounds = array<i64: 1, 4, 128>}, {transform_indices = @transform_1, window_bounds = array<i64: 1, 1, 4, 2>}, {transform_indices = @transform_2, window_bounds = array<i64: 1, 1, 128>}, {pipeline_mode = #tpu.pipeline_mode<synchronous>, transform_indices = @transform_3, window_bounds = array<i64: 3, 8, 4>}, {pipeline_mode = #tpu.pipeline_mode<synchronous>, transform_indices = @transform_4, window_bounds = array<i64: 8, 1>}, {transform_indices = @transform_5, window_bounds = array<i64: 1, 8, 128>}]} {
    %c0 = arith.constant 0 : index
    %c0_0 = arith.constant 0 : index
    %c0_1 = arith.constant 0 : index
    %0 = vector.load %arg2[%c0, %c0_0, %c0_1] : memref<1x4x128xbf16, #tpu.memory_space<vmem>>, vector<1x4x128xbf16>
    %1 = vector.shape_cast %0 : vector<1x4x128xbf16> to vector<4x128xbf16>
    %2 = arith.extf %1 : vector<4x128xbf16> to vector<4x128xf32>
    %c0_2 = arith.constant 0 : index
    %c0_3 = arith.constant 0 : index
    %c0_4 = arith.constant 0 : index
    %c0_5 = arith.constant 0 : index
    %3 = vector.load %arg3[%c0_2, %c0_3, %c0_4, %c0_5] : memref<1x1x4x2xbf16, #tpu.memory_space<vmem>>, vector<1x1x4x2xbf16>
    %4 = vector.shape_cast %3 : vector<1x1x4x2xbf16> to vector<4x2xbf16>
    %5 = arith.extf %4 : vector<4x2xbf16> to vector<4x2xf32>
    %6 = vector.extract_strided_slice %5 {offsets = [0, 0], sizes = [4, 1], strides = [1, 1]} : vector<4x2xf32> to vector<4x1xf32>
    %7 = vector.extract_strided_slice %5 {offsets = [0, 1], sizes = [4, 1], strides = [1, 1]} : vector<4x2xf32> to vector<4x1xf32>
    %8 = tpu.iota {dimensions = array<i32: 1>} : vector<4x128xi32>
    %c0_i32 = arith.constant 0 : i32
    %9 = vector.broadcast %c0_i32 : i32 to vector<4x128xi32>
    %10 = arith.cmpi eq, %8, %9 : vector<4x128xi32>
    %c1_i32 = arith.constant 1 : i32
    %11 = tpu.dynamic_rotate %2 by %c1_i32 dim 1 : vector<4x128xf32>, i32 -> vector<4x128xf32>
    %12 = vector.shape_cast %6 : vector<4x1xf32> to vector<4x1xf32>
    %13 = vector.broadcast %12 : vector<4x1xf32> to vector<4x128xf32>
    %14 = arith.select %10, %13, %11 : vector<4x128xi1>, vector<4x128xf32>
    %c127_i32 = arith.constant 127 : i32
    %15 = vector.broadcast %c127_i32 : i32 to vector<4x128xi32>
    %16 = arith.cmpi eq, %8, %15 : vector<4x128xi32>
    %c127_i32_6 = arith.constant 127 : i32
    %17 = tpu.dynamic_rotate %2 by %c127_i32_6 dim 1 : vector<4x128xf32>, i32 -> vector<4x128xf32>
    %18 = vector.shape_cast %7 : vector<4x1xf32> to vector<4x1xf32>
    %19 = vector.broadcast %18 : vector<4x1xf32> to vector<4x128xf32>
    %20 = arith.select %16, %19, %17 : vector<4x128xi1>, vector<4x128xf32>
    %c0_7 = arith.constant 0 : index
    %c0_8 = arith.constant 0 : index
    %c0_9 = arith.constant 0 : index
    %21 = vector.load %arg5[%c0_7, %c0_8, %c0_9] : memref<3x8x4xf32, #tpu.memory_space<vmem>>, vector<1x8x4xf32>
    %22 = vector.shape_cast %21 : vector<1x8x4xf32> to vector<8x4xf32>
    %cst = arith.constant dense<0.000000e+00> : vector<8x128xf32>
    %23 = tpu.matmul %22, %14, %cst {dimension_numbers = #tpu.dot_dimension_numbers<[1], [0], [0], [1], [0, 0, 1, 1], [], []>} : vector<8x4xf32>, vector<4x128xf32>, vector<8x128xf32> -> vector<8x128xf32>
    %c1 = arith.constant 1 : index
    %c0_10 = arith.constant 0 : index
    %c0_11 = arith.constant 0 : index
    %24 = vector.load %arg5[%c1, %c0_10, %c0_11] : memref<3x8x4xf32, #tpu.memory_space<vmem>>, vector<1x8x4xf32>
    %25 = vector.shape_cast %24 : vector<1x8x4xf32> to vector<8x4xf32>
    %cst_12 = arith.constant dense<0.000000e+00> : vector<8x128xf32>
    %26 = tpu.matmul %25, %2, %cst_12 {dimension_numbers = #tpu.dot_dimension_numbers<[1], [0], [0], [1], [0, 0, 1, 1], [], []>} : vector<8x4xf32>, vector<4x128xf32>, vector<8x128xf32> -> vector<8x128xf32>
    %27 = arith.addf %23, %26 : vector<8x128xf32>
    %c2 = arith.constant 2 : index
    %c0_13 = arith.constant 0 : index
    %c0_14 = arith.constant 0 : index
    %28 = vector.load %arg5[%c2, %c0_13, %c0_14] : memref<3x8x4xf32, #tpu.memory_space<vmem>>, vector<1x8x4xf32>
    %29 = vector.shape_cast %28 : vector<1x8x4xf32> to vector<8x4xf32>
    %cst_15 = arith.constant dense<0.000000e+00> : vector<8x128xf32>
    %30 = tpu.matmul %29, %20, %cst_15 {dimension_numbers = #tpu.dot_dimension_numbers<[1], [0], [0], [1], [0, 0, 1, 1], [], []>} : vector<8x4xf32>, vector<4x128xf32>, vector<8x128xf32> -> vector<8x128xf32>
    %31 = arith.addf %27, %30 : vector<8x128xf32>
    %c0_16 = arith.constant 0 : index
    %c0_17 = arith.constant 0 : index
    %32 = vector.load %arg6[%c0_16, %c0_17] : memref<8x1xf32, #tpu.memory_space<vmem>>, vector<8x1xf32>
    %33 = vector.broadcast %32 : vector<8x1xf32> to vector<8x128xf32>
    %34 = arith.addf %31, %33 : vector<8x128xf32>
    %35 = arith.mulf %34, %34 : vector<8x128xf32>
    %cst_18 = arith.constant dense<0.000000e+00> : vector<128xf32>
    %36 = vector.multi_reduction <add>, %35, %cst_18 [0] : vector<8x128xf32> to vector<128xf32>
    %37 = vector.shape_cast %36 : vector<128xf32> to vector<1x128xf32>
    %38 = math.rsqrt %37 : vector<1x128xf32>
    %cst_19 = arith.constant 1.000000e+04 : f32
    %39 = vector.broadcast %cst_19 : f32 to vector<1x128xf32>
    %40 = arith.minimumf %38, %39 : vector<1x128xf32>
    %c0_20 = arith.constant 0 : index
    %c0_21 = arith.constant 0 : index
    %c0_22 = arith.constant 0 : index
    %41 = vector.load %arg4[%c0_20, %c0_21, %c0_22] : memref<1x1x128xf32, #tpu.memory_space<vmem>>, vector<1x1x128xf32>
    %42 = vector.shape_cast %41 : vector<1x1x128xf32> to vector<1x128xf32>
    %cst_23 = arith.constant 2.82842708 : f32
    %43 = vector.broadcast %cst_23 : f32 to vector<1x128xf32>
    %44 = arith.mulf %40, %43 : vector<1x128xf32>
    %45 = arith.mulf %42, %44 : vector<1x128xf32>
    %46 = vector.broadcast %45 : vector<1x128xf32> to vector<8x128xf32>
    %47 = arith.mulf %34, %46 : vector<8x128xf32>
    %cst_24 = arith.constant 0.000000e+00 : f32
    %48 = vector.broadcast %cst_24 : f32 to vector<8x128xf32>
    %49 = arith.subf %48, %47 : vector<8x128xf32>
    %50 = math.exp %49 : vector<8x128xf32>
    %cst_25 = arith.constant 1.000000e+00 : f32
    %51 = vector.broadcast %cst_25 : f32 to vector<8x128xf32>
    %52 = arith.addf %51, %50 : vector<8x128xf32>
    %cst_26 = arith.constant 1.000000e+00 : f32
    %53 = vector.broadcast %cst_26 : f32 to vector<8x128xf32>
    %54 = arith.divf %53, %52 : vector<8x128xf32>
    %55 = arith.mulf %47, %54 : vector<8x128xf32>
    %c0_27 = arith.constant 0 : index
    %c0_28 = arith.constant 0 : index
    %c0_29 = arith.constant 0 : index
    %56 = vector.load %arg7[%c0_27, %c0_28, %c0_29] : memref<1x8x128xf32, #tpu.memory_space<vmem>>, vector<1x8x128xf32>
    %57 = vector.shape_cast %56 : vector<1x8x128xf32> to vector<8x128xf32>
    %58 = vector.shape_cast %55 : vector<8x128xf32> to vector<1x8x128xf32>
    tpu.vector_store %arg7[%c0_27, %c0_28, %c0_29], %58 {strides = array<i32>} : memref<1x8x128xf32, #tpu.memory_space<vmem>>, vector<1x8x128xf32>,
    return
  }
  func.func @transform_0(%arg0: i32, %arg1: i32) -> (i32, i32, i32) {
    %c0_i32 = arith.constant 0 : i32
    %c0_i32_0 = arith.constant 0 : i32
    return %arg0, %c0_i32, %arg1 : i32, i32, i32
  }
  func.func @transform_1(%arg0: i32, %arg1: i32) -> (i32, i32, i32, i32) {
    %c0_i32 = arith.constant 0 : i32
    %c0_i32_0 = arith.constant 0 : i32
    %c0_i32_1 = arith.constant 0 : i32
    return %arg0, %arg1, %c0_i32, %c0_i32_0 : i32, i32, i32, i32
  }
  func.func @transform_2(%arg0: i32, %arg1: i32) -> (i32, i32, i32) {
    %c0_i32 = arith.constant 0 : i32
    %c0_i32_0 = arith.constant 0 : i32
    return %arg0, %c0_i32, %arg1 : i32, i32, i32
  }
  func.func @transform_3(%arg0: i32, %arg1: i32) -> (i32, i32, i32) {
    %c0_i32 = arith.constant 0 : i32
    %c0_i32_0 = arith.constant 0 : i32
    %c0_i32_1 = arith.constant 0 : i32
    %c0_i32_2 = arith.constant 0 : i32
    return %c0_i32, %c0_i32_0, %c0_i32_1 : i32, i32, i32
  }
  func.func @transform_4(%arg0: i32, %arg1: i32) -> (i32, i32) {
    %c0_i32 = arith.constant 0 : i32
    %c0_i32_0 = arith.constant 0 : i32
    %c0_i32_1 = arith.constant 0 : i32
    return %c0_i32, %c0_i32_0 : i32, i32
  }
  func.func @transform_5(%arg0: i32, %arg1: i32) -> (i32, i32, i32) {
    %c0_i32 = arith.constant 0 : i32
    %c0_i32_0 = arith.constant 0 : i32
    return %arg0, %c0_i32, %arg1 : i32, i32, i32
  }
}

</mosaic_0001>

<bundles_post_ra>
// kernel: block_forward.1
= control target key start
LH: loop header
LB: loop body
LE: loop exit
PB: predicated region body
PF: predicated region fallthrough
CT: control target
= control target key end

     0   :  { %10 = vsyncpa [#allocation3], 0  ;;  %s913_s0 = inlined_call_operand.vmem [shape: bf16[2,4,128], index: 0, kind: input, shape index: {}]   ;;  %s914_s1 = inlined_call_operand.vmem [shape: bf16[2,1,4,2], index: 1, kind: input, shape index: {}]   ;;  %s915_s2 = inlined_call_operand.vmem [shape: f32[2,1,128], index: 2, kind: input, shape index: {}]   ;;  %s916_s3 = inlined_call_operand.vmem [shape: f32[3,8,4], index: 3, kind: input, shape index: {}]   ;;  %s917_s4 = inlined_call_operand.vmem [shape: f32[8,1], index: 4, kind: input, shape index: {}]   ;;  %s918_s5 = inlined_call_operand.hbm [shape: f32[2,8,128], index: 5, kind: output, shape index: {}]  }
   0x1   :  { %12 = vsyncpa [#allocation3 + $0x1], 0  ;;  %s788_s18 = smov 0   ;;  %s790_s19 = smov 0  }
   0x2   :  { %s792_s20 = smov 0   ;;  %s794_s21 = smov 0  }
   0x3   :  { %s796_s22 = smov 0   ;;  %s798_s23 = smov 0  }
   0x4 LB: > { %s583_s24 = sadd.s32 4294967295, %s751_s23   ;;  %s584_s25 = sadd.s32 4294967294, %s751_s23   ;;  %s751_s23 = sphi %s798_s23, %s18_s23   ;;  %s747_s22 = sphi %s796_s22, %s925_s22   ;;  %s743_s21 = sphi %s794_s21, %s924_s21   ;;  %s739_s20 = sphi %s792_s20, %s923_s20   ;;  %s735_s19 = sphi %s790_s19, %s922_s19   ;;  %s731_s18 = sphi %s788_s18, %s921_s18  }
   0x5   : > { %s30_s26 = sadd.s32 1, %s747_s22  ;;  %s165_s27 = sadd.s32 1, %s739_s20 }
   0x6   : > { %p32_p0 = scmp.ge.s32.totalorder %s30_s26, 2  ;;  %p175_p1 = scmp.ne.s32.totalorder %s739_s20, %s735_s19 }
   0x7   : > { %p176_p2 = scmp.eq.s32.totalorder %s583_s24, 1  ;;  %p181_p3 = scmp.ne.s32.totalorder %s735_s19, %s731_s18 }
   0x8   : > { %s927_s26 = smov (%p32_p0, %s30_s26), 0  ;;  %p182_p5 = scmp.eq.s32.totalorder %s584_s25, 1 }
   0x9   : > { %p828_p4 = por %p176_p2, %p175_p1  ;;  %s160_s29 = ssub.s32 %s747_s22, %s927_s26 }
   0xa   : > { %p587_p6 = scmp.ge.s32.totalorder %s751_s23, 1  ;;  %p163_p7 = scmp.eq.s32.totalorder %s160_s29, 0 }
   0xb   : > { %p835_p8 = por %p182_p5, %p181_p3  ;;  %p235_p9 = scmp.lt.s32.totalorder %s751_s23, 3 }
   0xc   : > { %s841_s6 = scalar_select %p163_p7, %s739_s20, %s165_s27  }
   0xd   : > { %p236_p10 = pnand %p587_p6, %p235_p9 }
   0xe   : > { %p278_p11 = scmp.lt.s32.totalorder (!%p236_p10), %s743_s21, 1  ;;  %s755_s15 = smov (!%p236_p10), 1  }
   0xf   : > { %239 = sbr.rel (%p236_p10) target bundleno = 365 (0x16d), region = 40  ;;  %s756_s16 = smov (!%p236_p10), 127  }
  0x10   : > { %s693_s12 = scalar_lea.hbm (!%p236_p10), %s918_s5, 16 }
  0x14   : > { %v753_v0 = vmov 1   ;;  %v754_v1 = vmov 0   ;;  %s845_s7 = scalar_select %p278_p11, %s743_s21, 1  ;;  %vm336_vm0 = vcmask 1043456   ;;  %vm332_vm1 = vcmask 31744   ;;  %v591_v6 = vld [vmem:[%s916_s3 + $0x8] sm:$0xff] }
  0x15   : > { %663 = vset.pattern.permute.xlu0 %v753_v0  ;;  %664 = vset.pattern.permute.xlu1 %v754_v1  ;;  %v415_v7 = vld [vmem:[%s917_s4] sm:$0xff]  ;;  %v302_v8 = vlaneseq  ;;  %v757_v9 = vmov 839922192   ;;  %v596_v19 = vld [vmem:[%s916_s3 + $0x10] sm:$0xff] }
  0x16   : > { %665 = vset.pattern.permute.xlu2 %v754_v1  ;;  %s589_s8 = sshll.u32 %s845_s7, 1  ;;  %v313_v10 = vunpack.c.l.s4 %v757_v9  ;;  %v329_v20 = vld [vmem:[%s916_s3] sm:$0xff]  ;;  %s297_s13 = scalar_lea.vmem %s915_s2, %s845_s7 }
  0x17   : > { %s291_s11 = scalar_lea.vmem %s914_s1, %s589_s8  ;;  %s284_s14 = scalar_lea.vmem %s913_s0, %s589_s8  ;;  %418 = vperm.xlu2 %665, %v415_v7   ;;  %v303_v13 = vand.u32 127, %v302_v8  ;;  %v440_v45 = vld [vmem:[%s297_s13] sm:$0x1] }
  0x18   : > { %v300_v2 = vld [vmem:[%s291_s11] sm:$0x3]  ;;  %v314_v14 = vunpack.c.0.s8 %v313_v10  ;;  %s600_s7 = sshll.u32 %s743_s21, 3 }
  0x19   : > { %v301_v3 = vunpack.c.l.bf16 %v300_v2  ;;  %v298_v4 = vld [vmem:[%s284_s14] sm:$0x3]  ;;  %vm304_vm2 = vcmp.eq.s32.totalorder %v303_v13, 0  ;;  %vm317_vm3 = vcmp.eq.s32.totalorder %v303_v13, 127  ;;  %s275_s14 = sand.u32 1, %s735_s19   ;;  %s480_s24 = scalar_lea.hbm %s918_s5, %s600_s7 }
  0x1a   : > { %v299_v5 = vunpack.c.l.bf16 %v298_v4  ;;  %s484_s29 = sshll.u32 %s480_s24, 4  ;;  %s469_s21 = scalar_lea.sflag [#allocation3], %s275_s14  ;;  %s485_s29 = int_to_ptr.hbm [resolvable:$true] %s484_s29 }
  0x1b   : > { %309 = vperm.xlu1 %664, %v301_v3   ;;  %321 = vperm.xlu0 %663, %v301_v3   ;;  %s687_s8 = sshra.s32 %s485_s29, 4  ;;  %s688_s8 = int_to_ptr.hbm [resolvable:$true] %s687_s8 }
  0x1c   : > { %592 = vmatpush.msk.msra.mxu0 %vm336_vm0, %v299_v5  ;;  %s689_s9 = scalar_lea.hbm %s688_s8, 8  ;;  %p694_p1 = scmp.lt.s32.totalorder %s688_s8, %s918_s5 }
  0x1d   : > { %593 = vmatmul.msk.f32.vlgmr.msra.gmra.mxu0 %vm332_vm1, %v591_v6  ;;  %p690_p12 = scmp.ne.s32.totalorder %s688_s8, %s689_s9  ;;  %p695_p2 = scmp.lt.s32.totalorder %s693_s12, %s689_s9 }
  0x1f   : > { %p691_p13 = pnand %p690_p12, %p828_p4  ;;  %p696_p3 = por %p695_p2, %p694_p1 }
  0x21   : > { %p692_p0 = pneg %p691_p13 }
  0x23   : > { %305 = vrot.lane.b32.xlu1 %v299_v5, %s755_s15  ;;  %318 = vrot.lane.b32.xlu0 %v299_v5, %s756_s16  ;;  %s588_s15 = sshll.u32 %s275_s14, 3  ;;  %p697_p5 = pnand %p696_p3, %p692_p0 }
  0x24   : > { %666 = vset.pattern.permute.xlu0 %v754_v1  ;;  %s277_s25 = scalar_lea.vmem [#allocation2], %s588_s15 }
  0x25   : > { %s482_s27 = sshll.u32 %s277_s25, 4  ;;  %s483_s27 = int_to_ptr.vmem [resolvable:$true] %s482_s27 }
  0x71   : > { %v419_v27 = vpop.permute.xlu2 %418 }
  0x8d   : > { %v310_v11 = vpop.permute.xlu1 %309  ;;  %v322_v12 = vpop.permute.xlu0 %321 }
  0x8e   : > { %v315_v15 = vperm.slane %v310_v11, %v314_v14  ;;  %v327_v16 = vperm.slane %v322_v12, %v314_v14 }
  0x95   : > { %v306_v17 = vpop.permute.xlu1 %305  ;;  %v319_v18 = vpop.permute.xlu0 %318 }
  0x96   : > { %v316_v21 = vsel %vm304_vm2, %v315_v15, %v306_v17  ;;  %v328_v22 = vsel %vm317_vm3, %v327_v16, %v319_v18 }
  0x97   : > { %594 = vmatpush.msk.msra.mxu1 %vm336_vm0, %v316_v21  ;;  %597 = vmatpush.msk.msra.mxu2 %vm336_vm0, %v328_v22 }
  0x98   : > { %598 = vmatmul.msk.f32.vlgmr.msra.gmra.mxu2 %vm332_vm1, %v596_v19  ;;  %595 = vmatmul.msk.f32.vlgmr.msra.gmra.mxu1 %vm332_vm1, %v329_v20 }
  0x9a   : > { %v357_v23 = vpop.f32.mrf.mxu0 }
 0x115   : > { %v383_v24 = vpop.f32.mrf.mxu1 }
 0x116   : > { %v384_v25 = vadd.f32 %v383_v24, %v357_v23 }
 0x11b   : > { %v411_v26 = vpop.f32.mrf.mxu2 }
 0x11c   : > { %v414_v28 = vadd.f32 %v411_v26, %v384_v25 }
 0x11e   : > { %v421_v29 = vadd.f32 %v419_v27, %v414_v28 }
 0x120   : > { %v422_v30 = vmul.f32 %v421_v29, %v421_v29 }
 0x122   : > { %v423_v31 = vrot.slane %v422_v30, 4 }
 0x124   : > { %v424_v32 = vadd.f32 %v423_v31, %v422_v30 }
 0x126   : > { %v425_v33 = vrot.slane %v424_v32, 2 }
 0x128   : > { %v426_v34 = vadd.f32 %v425_v33, %v424_v32 }
 0x12a   : > { %v427_v35 = vrot.slane %v426_v34, 1 }
 0x12c   : > { %v428_v36 = vadd.f32 %v427_v35, %v426_v34 }
 0x12e   : > { %667 = vrsqrt.f32 %v428_v36  ;;  %vm435_vm5 = vweird.f32 %v428_v36 }
 0x134   : > { %v668_v37 = vpop.eup %667 }
 0x135   : > { %v430_v38 = vmul.f32 %v668_v37, %v428_v36  ;;  %vm436_vm4 = vweird.f32 %v668_v37 }
 0x136   : > { %vm437_vm6 = vmor %vm435_vm5, %vm436_vm4 }
 0x137   : > { %v431_v39 = vmul.f32 %v668_v37, %v430_v38 }
 0x139   : > { %v432_v40 = vmul.f32 0.5, %v431_v39 }
 0x13b   : > { %v433_v41 = vsub.f32 1.5, %v432_v40 }
 0x13d   : > { %v434_v42 = vmul.f32 %v668_v37, %v433_v41 }
 0x13f   : > { %v438_v43 = vsel %vm437_vm6, %v668_v37, %v434_v42 }
 0x140   : > { %v439_v44 = vmin.f32 %v438_v43, 10000.0 }
 0x142   : > { %v441_v46 = vmul.f32 2.828427, %v439_v44 }
 0x144   : > { %v442_v47 = vmul.f32 %v441_v46, %v440_v45 }
 0x146   : > { %v444_v48 = vperm.slane %v442_v47, 0 }
 0x148   : > { %v446_v49 = vmul.f32 %v444_v48, %v421_v29 }
 0x14a   : > { %v447_v50 = vsub.f32 0.0, %v446_v49 }
 0x14c   : > { %v448_v51 = vmul.f32 1.442695, %v447_v50 }
 0x14e   : > { %669 = vpow2.f32 %v448_v51 }
 0x154   : > { %v670_v52 = vpop.eup %669 }
 0x155   : > { %v450_v53 = vadd.f32 1.0, %v670_v52 }
 0x157   : > { %671 = vrcp.f32 %v450_v53  ;;  %v462_v57 = vand.u32 2147483648, %v450_v53  ;;  %v460_v59 = vand.u32 2147483647, %v450_v53  ;;  %vm456_vm8 = vweird.f32 %v450_v53 }
 0x159   : > { %v463_v61 = vor.u32 1.1754944e-38, %v462_v57  ;;  %vm461_vm10 = vcmp.eq.f32.partialorder %v460_v59, 8.507059e+37 }
 0x15d   : > { %v672_v54 = vpop.eup %671 }
 0x15e   : > { %v452_v55 = vmul.f32 %v672_v54, %v450_v53  ;;  %vm457_vm7 = vweird.f32 %v672_v54 }
 0x15f   : > { %vm458_vm9 = vmor %vm456_vm8, %vm457_vm7 }
 0x160   : > { %v453_v56 = vsub.f32 1.0, %v452_v55 }
 0x162   : > { %v454_v58 = vmul.f32 %v672_v54, %v453_v56 }
 0x164   : > { %v455_v60 = vadd.f32 %v672_v54, %v454_v58 }
 0x166   : > { %v459_v62 = vsel %vm458_vm9, %v672_v54, %v455_v60 }
 0x167   : > { %v464_v63 = vsel %vm461_vm10, %v463_v61, %v459_v62 }
 0x168   : > { %v466_v0 = vmul.f32 %v464_v63, %v446_v49 }
 0x16a   : > { %467 = vst [vmem:[%s277_s25] sm:$0xff] %v466_v0 }
 0x16b   : > { %700 = shalt.err (!%p697_p5)
}
 0x16c   : > { %603 = dma.vmem_to_hbm [thread:$0]  (%p828_p4), %s483_s27, 128, %s485_s29, %s469_s21  }
 0x16d PF: > { %p609_p6 = scmp.ge.s32.totalorder %s751_s23, 2  ;;  %s496_s14 = sand.u32 1, %s731_s18  }
 0x16e   : > { %s497_s7 = scalar_lea.sflag [#allocation3], %s496_s14 }
 0x16f   : > { %p606_p7 = pnand %p609_p6, %p835_p8 }
 0x171   : > { %p607_p9 = pneg %p606_p7 }
 0x173   : > { %726 = dma.done.wait (%p607_p9), %s497_s7, 128  }
 0x174   : > { %728 = vsyncadd (%p607_p9), %s497_s7, 4294967168  ;;  %s18_s23 = sadd.s32 1, %s751_s23   ;;  %s921_s18 = smov %s735_s19 }
 0x175   : > { %p15_p10 = scmp.ge.s32.totalorder %s18_s23, 4   ;;  %s922_s19 = smov %s739_s20 }
 0x176   : > { %s923_s20 = smov %s841_s6  ;;  %s924_s21 = smov %s747_s22 }
 0x177   : > { %s925_s22 = smov %s927_s26  ;;  %17 = sbr.rel (!%p15_p10) target bundleno = 4 (0x4), region = 83 }
 0x17c   :  { %503 = vsyncpa [#allocation3], 1 }
 0x17d   :  { %505 = vsyncpa [#allocation3 + $0x1], 1 }

</bundles_post_ra>
